<compile_context>
chip_gen: v7x
topology: tpu7x:2x2x1
jax: 0.10.0
libtpu: 0.0.40
codegen_flags: <defaults>
</compile_context>

<pallas_src>
import jax
import jax.numpy as jnp
from jax.experimental import pallas as pl
from jax.experimental.pallas import tpu as pltpu


def identity(x: jax.Array) -> jax.Array:
    """Identity.forward: return the input directly (no copy, no kernel)."""
    return x


def _identity_kernel(x_ref, o_ref):
    # Straight copy of the current VMEM tile.
    o_ref[...] = x_ref[...]


def _generation_config() -> dict:
    """Per-generation tile size / scoped-VMEM budget for the copy benchmark."""
    try:
        kind = jax.devices()[0].device_kind.lower()
    except Exception:  # pragma: no cover - defensive
        kind = ""
    if "v7" in kind:
        # 10 MiB tiles -> 40 MiB double-buffered working set < 48 MiB scoped
        # limit < 64 MiB physical VMEM.  Two TensorCores per chip.
        return dict(tile_bytes=10 << 20, vmem_limit=48 << 20, two_tc=True)
    if "v6" in kind:
        # 8 MiB tiles -> 32 MiB working set; raise scoped limit above the
        # 32 MiB default (128 MiB physical VMEM).
        return dict(tile_bytes=8 << 20, vmem_limit=64 << 20, two_tc=False)
    if "v5e" in kind or "v5 lite" in kind or "v5lite" in kind:
        # 3 MiB tiles -> 12 MiB working set, safely under the 16 MiB default.
        return dict(tile_bytes=3 << 20, vmem_limit=None, two_tc=False)
    # Unknown generation (v4 / v5p / interpret): conservative tiles that fit
    # the smallest (16 MiB) default scoped-VMEM limit with double buffering.
    return dict(tile_bytes=3 << 20, vmem_limit=None, two_tc=False)


def _pick_lane(n: int, sublanes: int):
    """Widest 128-multiple dividing n that keeps >= `sublanes` rows.

    Falls back to the narrowest dividing 128-multiple (maximizes sublane
    occupancy on tiny inputs) or None if no 128-multiple divides n.
    """
    fallback = None
    for c in (4096, 2048, 1024, 512, 256, 128):
        if n % c == 0:
            if n // c >= sublanes:
                return c
            fallback = c  # keeps the smallest dividing candidate
    return fallback


def _identity_copy_2d(x2d: jax.Array, cfg: dict) -> jax.Array:
    """Pallas HBM->HBM copy of a (rows, lane) array; lane is a 128-multiple."""
    rows, lane = x2d.shape
    dtype_bytes = jnp.dtype(x2d.dtype).itemsize
    # dtype-aware packed tile: f32 -> 8 sublanes, bf16 -> 16, int8/fp8 -> 32.
    sublanes = max(8, 32 // max(dtype_bytes, 1))

    target_rows = max(
        sublanes,
        (cfg["tile_bytes"] // (lane * dtype_bytes)) // sublanes * sublanes,
    )
    block_rows = min(target_rows, rows)          # sublane multiple, or full dim
    grid = (pl.cdiv(rows, block_rows),)          # ragged edge masked by Pallas

    # On v7x (2 TensorCores/chip) split the grid steps across both cores so the
    # copy can reach full-chip HBM bandwidth; single-TC chips use "parallel".
    if cfg["two_tc"] and grid[0] >= 2 and hasattr(pltpu, "CORE_PARALLEL"):
        dim_sem = (pltpu.CORE_PARALLEL,)
    else:
        dim_sem = ("parallel",)

    spec = pl.BlockSpec((block_rows, lane), lambda i: (i, 0))
    return pl.pallas_call(
        _identity_kernel,
        out_shape=jax.ShapeDtypeStruct((rows, lane), x2d.dtype),
        grid_spec=pltpu.PrefetchScalarGridSpec(
            num_scalar_prefetch=0,
            grid=grid,
            in_specs=[spec],
            out_specs=spec,
        ),
        compiler_params=pltpu.CompilerParams(
            dimension_semantics=dim_sem,
            vmem_limit_bytes=cfg["vmem_limit"],
        ),
        cost_estimate=pl.CostEstimate(
            flops=0,
            transcendentals=0,
            bytes_accessed=2 * rows * lane * dtype_bytes,  # pure memory op
        ),
    )(x2d)


def identity_copy(x: jax.Array) -> jax.Array:
    """Identity as an explicit Pallas HBM->HBM copy (benchmark artifact only)."""
    n = x.size
    if n == 0:
        return x

    cfg = _generation_config()
    dtype_bytes = jnp.dtype(x.dtype).itemsize
    sublanes = max(8, 32 // max(dtype_bytes, 1))

    lane = _pick_lane(n, sublanes)
    if lane is not None:
        # Contiguous reshape: metadata only, no HBM traffic.
        out2d = _identity_copy_2d(x.reshape(n // lane, lane), cfg)
        return out2d.reshape(x.shape)

    # Ragged fallback: element count is not a multiple of 128.  Copy the
    # largest sublanes*128-aligned prefix through the dense 2D kernel and let
    # XLA handle the tiny tail (< one packed vreg, <= 16 KiB).
    vreg_elems = sublanes * 128
    bulk = (n // vreg_elems) * vreg_elems
    flat = x.reshape(-1)
    if bulk == 0:
        # Smaller than one packed vreg: a kernel cannot beat a plain identity.
        return x
    bulk_lane = _pick_lane(bulk, sublanes)  # always >= 128 here
    bulk_out = _identity_copy_2d(
        flat[:bulk].reshape(bulk // bulk_lane, bulk_lane), cfg
    )
    # TODO(synk): the concatenate re-copies the bulk once in XLA; acceptable on
    # this rare path because the real Identity (identity()) never copies at all.
    out = jnp.concatenate([bulk_out.reshape(-1), flat[bulk:]])
    return out.reshape(x.shape)


if __name__ == "__main__":
    key = jax.random.PRNGKey(0)
    # Small NCHW input consistent with an EfficientNet feature map.
    x = jax.random.normal(key, (2, 4, 16, 16), dtype=jnp.float32)

    # 1) True Identity forward: zero HBM traffic, no kernel launch.
    y = identity(x)
    assert y is x

    # 2) Pallas copy benchmark kernel, lane-dense full-sublane path.
    y_copy = identity_copy(x)
    jax.block_until_ready(y_copy)
    assert y_copy.shape == x.shape
    assert y_copy.dtype == x.dtype
    assert bool(jnp.all(y_copy == x))

    # 3) Ragged fallback (size not a multiple of 128): bulk + tail split.
    x_ragged = jax.random.normal(key, (8 * 128 * 3 + 17,), dtype=jnp.float32)
    y_ragged = identity_copy(x_ragged)
    jax.block_until_ready(y_ragged)
    assert y_ragged.shape == x_ragged.shape
    assert bool(jnp.all(y_ragged == x_ragged))

    print("KERNEL_OK")
</pallas_src>

<mosaic_0001>
module attributes {stable_mosaic.version = 11 : i64} {
  func.func @_identity_kernel(%arg0: i32, %arg1: memref<8x256xf32, #tpu.memory_space<vmem>>, %arg2: memref<8x256xf32, #tpu.memory_space<vmem>>) attributes {dimension_semantics = [#tpu.dimension_semantics<parallel>], iteration_bounds = array<i64: 1>, scalar_prefetch = 0 : i64, scratch_operands = 0 : i64, tpu.core_type = #tpu.core_type<tc>, window_params = [{transform_indices = @transform_0, window_bounds = array<i64: 8, 256>}, {transform_indices = @transform_1, window_bounds = array<i64: 8, 256>}]} {
    %c0 = arith.constant 0 : index
    %c0_0 = arith.constant 0 : index
    %0 = vector.load %arg1[%c0, %c0_0] : memref<8x256xf32, #tpu.memory_space<vmem>>, vector<8x256xf32>
    %c0_1 = arith.constant 0 : index
    %c0_2 = arith.constant 0 : index
    %1 = vector.load %arg2[%c0_1, %c0_2] : memref<8x256xf32, #tpu.memory_space<vmem>>, vector<8x256xf32>
    tpu.vector_store %arg2[%c0_1, %c0_2], %0 {strides = array<i32>} : memref<8x256xf32, #tpu.memory_space<vmem>>, vector<8x256xf32>,
    return
  }
  func.func @transform_0(%arg0: i32) -> (i32, i32) {
    %c0_i32 = arith.constant 0 : i32
    %c0_i32_0 = arith.constant 0 : i32
    return %arg0, %c0_i32 : i32, i32
  }
  func.func @transform_1(%arg0: i32) -> (i32, i32) {
    %c0_i32 = arith.constant 0 : i32
    %c0_i32_0 = arith.constant 0 : i32
    return %arg0, %c0_i32 : i32, i32
  }
}

</mosaic_0001>

<bundles_post_ra>
// kernel: tpu_custom_call.1
= control target key start
LH: loop header
LB: loop body
LE: loop exit
PB: predicated region body
PF: predicated region fallthrough
CT: control target
= control target key end

     0   :  { %6 = vsyncpa [#allocation3], 0  ;;  %s126_s0 = inlined_call_operand.hbm [shape: f32[8,256], index: 0, kind: input, shape index: {}]   ;;  %s127_s1 = inlined_call_operand.hbm [shape: f32[8,256], index: 1, kind: output, shape index: {}]  }
   0x1   :  { %7 = vsyncpa [#allocation4], 0  ;;  %s90_s6 = smov [#allocation2]   ;;  %s42_s10 = scalar_lea.hbm %s126_s0, 256 }
   0x2   :  { %s14_s7 = sshll.u32 %s90_s6, 4  ;;  %p43_p0 = scmp.ne.s32.totalorder %s126_s0, %s42_s10  ;;  %s15_s7 = int_to_ptr.vmem [resolvable:$true] %s14_s7 }
   0x3   :  { %p46_p1 = scmp.lt.u32.totalorder %s42_s10, %s126_s0 }
   0x5   :  { %p48_p2 = pnand %p46_p1, %p43_p0 }
   0x7   :  { %51 = shalt.err (!%p48_p2)
}
   0x8   :  { %s52_s15 = scalar_lea.vmem %s15_s7, 256  ;;  %p57_p4 = scmp.lt.s32.totalorder %s15_s7, %s15_s7 }
   0x9   :  { %p53_p3 = scmp.ne.s32.totalorder %s15_s7, %s52_s15  ;;  %p58_p5 = scmp.lt.s32.totalorder %s52_s15, %s52_s15 }
   0xb   :  { %p59_p6 = por %p58_p5, %p57_p4 }
   0xd   :  { %p60_p7 = pnand %p59_p6, %p53_p3 }
   0xf   :  { %63 = shalt.err (!%p60_p7)
}
  0x10   :  { %17 = dma.hbm_to_vmem [thread:$0]  %s126_s0, 256, %s15_s7, [#allocation3]  }
  0x11   :  { %86 = dma.done.wait [#allocation3], 256  }
  0x12   :  { %87 = vsyncadd [#allocation3], 4294967040  ;;  %s91_s18 = smov [#allocation5]   ;;  %v21_v0 = vld [vmem:[#allocation2] sm:$0xff]  ;;  %v22_v1 = vld [vmem:[#allocation2 + $0x8] sm:$0xff] }
  0x13   :  { %s31_s19 = sshll.u32 %s91_s18, 4  ;;  %23 = vst [vmem:[#allocation5] sm:$0xff] %v21_v0  ;;  %24 = vst [vmem:[#allocation5 + $0x8] sm:$0xff] %v22_v1  ;;  %s32_s19 = int_to_ptr.vmem [resolvable:$true] %s31_s19 }
  0x14   :  { %s64_s20 = scalar_lea.vmem %s32_s19, 256  ;;  %p69_p9 = scmp.lt.s32.totalorder %s32_s19, %s32_s19 }
  0x15   :  { %p65_p8 = scmp.ne.s32.totalorder %s32_s19, %s64_s20  ;;  %p70_p10 = scmp.lt.s32.totalorder %s64_s20, %s64_s20 }
  0x17   :  { %p71_p11 = por %p70_p10, %p69_p9 }
  0x19   :  { %p72_p12 = pnand %p71_p11, %p65_p8 }
  0x1b   :  { %75 = shalt.err (!%p72_p12)
}
  0x1c   :  { %s76_s0 = scalar_lea.hbm %s127_s1, 256 }
  0x1d   :  { %p77_p13 = scmp.ne.s32.totalorder %s127_s1, %s76_s0  ;;  %p80_p0 = scmp.lt.u32.totalorder %s76_s0, %s127_s1 }
  0x1f   :  { %p82_p1 = pnand %p80_p0, %p77_p13 }
  0x21   :  { %85 = shalt.err (!%p82_p1)
}
  0x22   :  { %34 = dma.vmem_to_hbm [thread:$0]  %s32_s19, 256, %s127_s1, [#allocation4]  }
  0x23   :  { %88 = dma.done.wait [#allocation4], 256  }
  0x24   :  { %89 = vsyncadd [#allocation4], 4294967040 }
  0x25   :  { %38 = vsyncpa [#allocation3], 1 }
  0x26   :  { %39 = vsyncpa [#allocation4], 1 }

</bundles_post_ra>
